<compile_context>
chip_gen: v7x
topology: tpu7x:2x2x1
jax: 0.10.0
libtpu: 0.0.40
codegen_flags: <defaults>
</compile_context>

<pallas_src>
import jax
import jax.numpy as jnp
from jax.experimental import pallas as pl
from jax.experimental.pallas import tpu as pltpu


def bitnet_kernel(x_ref, w1_ref, b1_ref, w2_ref, b2_ref, out_ref):
    # fc1: bf16 x bf16 on the MXU, f32 accumulate, f32 bias + sigmoid.
    h = jnp.dot(x_ref[...], w1_ref[...], preferred_element_type=jnp.float32)
    h = h + b1_ref[...]                                   # (1, H) broadcasts
    # sigmoid = 1 / (1 + exp(-h)): exp and reciprocal both run on the EUP,
    # keeping the divide off the VALU slot.
    h = pl.reciprocal(1.0 + jnp.exp(-h), approx=True)

    # fc2: cast hidden activations to bf16 for the MXU, f32 accumulate.
    logits = jnp.dot(h.astype(jnp.bfloat16), w2_ref[...],
                     preferred_element_type=jnp.float32)
    logits = logits + b2_ref[...]          # padded classes carry a -1e30 bias

    # Numerically stable log_softmax over the lane-dense (padded) class axis.
    m = jnp.max(logits, axis=-1, keepdims=True)
    shifted = logits - m
    lse = jnp.log(jnp.sum(jnp.exp(shifted), axis=-1, keepdims=True))
    out_ref[...] = (shifted - lse).astype(out_ref.dtype)


def bitnet_forward(x, w1, b1, w2, b2, *, block_b=128):
    """x: (B, F) f32; w1: (F, H); b1: (1, H); w2: (H, O); b2: (1, O)."""
    B, F = x.shape
    H = w1.shape[1]
    O = w2.shape[1]

    # --- lane-dense class axis: pad O up to a multiple of 128 ----------------
    OP = max(128, pl.cdiv(O, 128) * 128)
    w2p = jnp.zeros((H, OP), jnp.float32).at[:, :O].set(w2.astype(jnp.float32))
    b2p = jnp.full((1, OP), -1e30, jnp.float32).at[:, :O].set(
        b2.astype(jnp.float32))

    # --- bf16 storage for the MXU operands -----------------------------------
    xb = x.astype(jnp.bfloat16)
    w1b = w1.astype(jnp.bfloat16)
    w2b = w2p.astype(jnp.bfloat16)

    # --- batch tiling: TB is a multiple of 8; pad B up to a multiple of TB ---
    if B >= block_b:
        TB = block_b
    else:
        TB = max(8, pl.cdiv(B, 8) * 8)
    BP = pl.cdiv(B, TB) * TB
    if BP != B:
        xb = jnp.pad(xb, ((0, BP - B), (0, 0)))
    grid = (BP // TB,)

    # --- VMEM budget derived from the actual blocks (x2 for double buffers) --
    block_bytes = (TB * F * 2 + F * H * 2 + H * 4 + H * OP * 2 + OP * 4
                   + TB * OP * 4)
    vmem_limit = int(min(2 * block_bytes + (4 << 20), 32 << 20))

    out = pl.pallas_call(
        bitnet_kernel,
        out_shape=jax.ShapeDtypeStruct((BP, OP), jnp.float32),
        grid=grid,
        in_specs=[
            pl.BlockSpec((TB, F), lambda i: (i, 0)),   # x: tiled over batch
            pl.BlockSpec((F, H), lambda i: (0, 0)),    # w1: VMEM-resident
            pl.BlockSpec((1, H), lambda i: (0, 0)),    # b1
            pl.BlockSpec((H, OP), lambda i: (0, 0)),   # w2 (lane-padded)
            pl.BlockSpec((1, OP), lambda i: (0, 0)),   # b2 (lane-padded)
        ],
        out_specs=pl.BlockSpec((TB, OP), lambda i: (i, 0)),
        compiler_params=pltpu.CompilerParams(
            dimension_semantics=("parallel",),
            vmem_limit_bytes=vmem_limit,
        ),
    )(xb, w1b, b1.astype(jnp.float32), w2b, b2p)

    # Drop batch padding and the padded classes.
    return out[:B, :O]


def init_params(key, input_size, hidden_size, output_size):
    # PyTorch nn.Linear default init: U(-1/sqrt(fan_in), 1/sqrt(fan_in)).
    k1, k2, k3, k4 = jax.random.split(key, 4)
    bound1 = 1.0 / (input_size ** 0.5)
    bound2 = 1.0 / (hidden_size ** 0.5)
    w1 = jax.random.uniform(k1, (input_size, hidden_size), jnp.float32, -bound1, bound1)
    b1 = jax.random.uniform(k2, (1, hidden_size), jnp.float32, -bound1, bound1)
    w2 = jax.random.uniform(k3, (hidden_size, output_size), jnp.float32, -bound2, bound2)
    b2 = jax.random.uniform(k4, (1, output_size), jnp.float32, -bound2, bound2)
    return w1, b1, w2, b2


def reference_f32(x, w1, b1, w2, b2):
    # Exact PyTorch-module semantics in pure JAX, all f32.
    h = jax.nn.sigmoid(x @ w1 + b1)
    return jax.nn.log_softmax(h @ w2 + b2, axis=1)


def reference_bf16(x, w1, b1, w2, b2):
    # Same dtype path as the kernel (bf16 MXU operands, f32 accumulation).
    f = lambda a: a.astype(jnp.bfloat16).astype(jnp.float32)
    h = jax.nn.sigmoid(f(x) @ f(w1) + b1)
    return jax.nn.log_softmax(f(h) @ f(w2) + b2, axis=1)


if __name__ == "__main__":
    # Module implies: input_size = 28*28 = 784, hidden_size = 512, output = 10.
    input_size, hidden_size, output_size = 28 * 28, 512, 10

    key = jax.random.PRNGKey(0)
    kx, kp, kx2 = jax.random.split(key, 3)
    w1, b1, w2, b2 = init_params(kp, input_size, hidden_size, output_size)

    # Small batch (single grid step).
    x_small = jax.random.normal(kx, (8, input_size), jnp.float32)
    out_small = jax.block_until_ready(bitnet_forward(x_small, w1, b1, w2, b2))
    assert out_small.shape == (8, output_size)

    # Larger batch exercising the batch-tiled "parallel" grid (2 steps of 128).
    x_big = jax.random.normal(kx2, (256, input_size), jnp.float32)
    out_big = jax.block_until_ready(bitnet_forward(x_big, w1, b1, w2, b2))
    assert out_big.shape == (256, output_size)

    for x, out in ((x_small, out_small), (x_big, out_big)):
        ref_match = reference_bf16(x, w1, b1, w2, b2)   # dtype-matched
        ref_full = reference_f32(x, w1, b1, w2, b2)     # original f32 semantics
        assert jnp.allclose(out, ref_match, atol=1e-2, rtol=1e-2), \
            "mismatch vs dtype-matched JAX reference"
        assert jnp.allclose(out, ref_full, atol=5e-2, rtol=5e-2), \
            "mismatch vs f32 JAX reference"
        # log-softmax rows must (approximately) normalize over the 10 classes.
        assert jnp.allclose(jnp.sum(jnp.exp(out), axis=1), 1.0, atol=1e-3)

    print("KERNEL_OK")
</pallas_src>

<mosaic_0001>
module attributes {stable_mosaic.version = 11 : i64} {
  func.func @bitnet_kernel(%arg0: i32, %arg1: memref<8x784xbf16, #tpu.memory_space<vmem>>, %arg2: memref<784x512xbf16, #tpu.memory_space<vmem>>, %arg3: memref<1x512xf32, #tpu.memory_space<vmem>>, %arg4: memref<512x128xbf16, #tpu.memory_space<vmem>>, %arg5: memref<1x128xf32, #tpu.memory_space<vmem>>, %arg6: memref<8x128xf32, #tpu.memory_space<vmem>>) attributes {dimension_semantics = [#tpu.dimension_semantics<parallel>], iteration_bounds = array<i64: 1>, scalar_prefetch = 0 : i64, scratch_operands = 0 : i64, tpu.core_type = #tpu.core_type<tc>, window_params = [{transform_indices = @transform_0, window_bounds = array<i64: 8, 784>}, {pipeline_mode = #tpu.pipeline_mode<synchronous>, transform_indices = @transform_1, window_bounds = array<i64: 784, 512>}, {pipeline_mode = #tpu.pipeline_mode<synchronous>, transform_indices = @transform_2, window_bounds = array<i64: 1, 512>}, {pipeline_mode = #tpu.pipeline_mode<synchronous>, transform_indices = @transform_3, window_bounds = array<i64: 512, 128>}, {pipeline_mode = #tpu.pipeline_mode<synchronous>, transform_indices = @transform_4, window_bounds = array<i64: 1, 128>}, {transform_indices = @transform_5, window_bounds = array<i64: 8, 128>}]} {
    %c0 = arith.constant 0 : index
    %c0_0 = arith.constant 0 : index
    %0 = vector.load %arg1[%c0, %c0_0] : memref<8x784xbf16, #tpu.memory_space<vmem>>, vector<8x784xbf16>
    %c0_1 = arith.constant 0 : index
    %c0_2 = arith.constant 0 : index
    %1 = vector.load %arg2[%c0_1, %c0_2] : memref<784x512xbf16, #tpu.memory_space<vmem>>, vector<784x512xbf16>
    %cst = arith.constant dense<0.000000e+00> : vector<8x512xf32>
    %2 = tpu.matmul %0, %1, %cst {dimension_numbers = #tpu.dot_dimension_numbers<[1], [0], [0], [1], [0, 0, 1, 1], [], []>} : vector<8x784xbf16>, vector<784x512xbf16>, vector<8x512xf32> -> vector<8x512xf32>
    %c0_3 = arith.constant 0 : index
    %c0_4 = arith.constant 0 : index
    %3 = vector.load %arg3[%c0_3, %c0_4] : memref<1x512xf32, #tpu.memory_space<vmem>>, vector<1x512xf32>
    %4 = vector.broadcast %3 : vector<1x512xf32> to vector<8x512xf32>
    %5 = arith.addf %2, %4 : vector<8x512xf32>
    %cst_5 = arith.constant 0.000000e+00 : f32
    %6 = vector.broadcast %cst_5 : f32 to vector<8x512xf32>
    %7 = arith.subf %6, %5 : vector<8x512xf32>
    %8 = math.exp %7 : vector<8x512xf32>
    %cst_6 = arith.constant 1.000000e+00 : f32
    %9 = vector.broadcast %cst_6 : f32 to vector<8x512xf32>
    %10 = arith.addf %9, %8 : vector<8x512xf32>
    %11 = tpu.reciprocal %10 {approx = true} : vector<8x512xf32> -> vector<8x512xf32>
    %12 = arith.truncf %11 : vector<8x512xf32> to vector<8x512xbf16>
    %c0_7 = arith.constant 0 : index
    %c0_8 = arith.constant 0 : index
    %13 = vector.load %arg4[%c0_7, %c0_8] : memref<512x128xbf16, #tpu.memory_space<vmem>>, vector<512x128xbf16>
    %cst_9 = arith.constant dense<0.000000e+00> : vector<8x128xf32>
    %14 = tpu.matmul %12, %13, %cst_9 {dimension_numbers = #tpu.dot_dimension_numbers<[1], [0], [0], [1], [0, 0, 1, 1], [], []>} : vector<8x512xbf16>, vector<512x128xbf16>, vector<8x128xf32> -> vector<8x128xf32>
    %c0_10 = arith.constant 0 : index
    %c0_11 = arith.constant 0 : index
    %15 = vector.load %arg5[%c0_10, %c0_11] : memref<1x128xf32, #tpu.memory_space<vmem>>, vector<1x128xf32>
    %16 = vector.broadcast %15 : vector<1x128xf32> to vector<8x128xf32>
    %17 = arith.addf %14, %16 : vector<8x128xf32>
    %cst_12 = arith.constant dense<0xFF800000> : vector<8xf32>
    %18 = vector.multi_reduction <maximumf>, %17, %cst_12 [1] : vector<8x128xf32> to vector<8xf32>
    %19 = vector.shape_cast %18 : vector<8xf32> to vector<8x1xf32>
    %20 = vector.broadcast %19 : vector<8x1xf32> to vector<8x128xf32>
    %21 = arith.subf %17, %20 : vector<8x128xf32>
    %22 = math.exp %21 : vector<8x128xf32>
    %cst_13 = arith.constant dense<0.000000e+00> : vector<8xf32>
    %23 = vector.multi_reduction <add>, %22, %cst_13 [1] : vector<8x128xf32> to vector<8xf32>
    %24 = vector.shape_cast %23 : vector<8xf32> to vector<8x1xf32>
    %25 = math.log %24 : vector<8x1xf32>
    %26 = vector.broadcast %25 : vector<8x1xf32> to vector<8x128xf32>
    %27 = arith.subf %21, %26 : vector<8x128xf32>
    %c0_14 = arith.constant 0 : index
    %c0_15 = arith.constant 0 : index
    %28 = vector.load %arg6[%c0_14, %c0_15] : memref<8x128xf32, #tpu.memory_space<vmem>>, vector<8x128xf32>
    tpu.vector_store %arg6[%c0_14, %c0_15], %27 {strides = array<i32>} : memref<8x128xf32, #tpu.memory_space<vmem>>, vector<8x128xf32>,
    return
  }
  func.func @transform_0(%arg0: i32) -> (i32, i32) {
    %c0_i32 = arith.constant 0 : i32
    %c0_i32_0 = arith.constant 0 : i32
    return %arg0, %c0_i32 : i32, i32
  }
  func.func @transform_1(%arg0: i32) -> (i32, i32) {
    %c0_i32 = arith.constant 0 : i32
    %c0_i32_0 = arith.constant 0 : i32
    %c0_i32_1 = arith.constant 0 : i32
    return %c0_i32, %c0_i32_0 : i32, i32
  }
  func.func @transform_2(%arg0: i32) -> (i32, i32) {
    %c0_i32 = arith.constant 0 : i32
    %c0_i32_0 = arith.constant 0 : i32
    %c0_i32_1 = arith.constant 0 : i32
    return %c0_i32, %c0_i32_0 : i32, i32
  }
  func.func @transform_3(%arg0: i32) -> (i32, i32) {
    %c0_i32 = arith.constant 0 : i32
    %c0_i32_0 = arith.constant 0 : i32
    %c0_i32_1 = arith.constant 0 : i32
    return %c0_i32, %c0_i32_0 : i32, i32
  }
  func.func @transform_4(%arg0: i32) -> (i32, i32) {
    %c0_i32 = arith.constant 0 : i32
    %c0_i32_0 = arith.constant 0 : i32
    %c0_i32_1 = arith.constant 0 : i32
    return %c0_i32, %c0_i32_0 : i32, i32
  }
  func.func @transform_5(%arg0: i32) -> (i32, i32) {
    %c0_i32 = arith.constant 0 : i32
    %c0_i32_0 = arith.constant 0 : i32
    return %arg0, %c0_i32 : i32, i32
  }
}

</mosaic_0001>

<bundles_post_ra>
// kernel: tpu_custom_call.1
= control target key start
LH: loop header
LB: loop body
LE: loop exit
PB: predicated region body
PF: predicated region fallthrough
CT: control target
= control target key end

     0   :  { %10 = vsyncpa [#allocation3], 0  ;;  %s2884_s0 = inlined_call_operand.hbm [shape: bf16[8,784], index: 0, kind: input, shape index: {}]   ;;  %s2885_s1 = inlined_call_operand.hbm [shape: bf16[784,512], index: 1, kind: input, shape index: {}]   ;;  %s2886_s2 = inlined_call_operand.vmem [shape: f32[1,512], index: 2, kind: input, shape index: {}]   ;;  %s2887_s3 = inlined_call_operand.hbm [shape: bf16[512,128], index: 3, kind: input, shape index: {}]   ;;  %s2888_s4 = inlined_call_operand.vmem [shape: f32[1,128], index: 4, kind: input, shape index: {}]   ;;  %s2889_s5 = inlined_call_operand.hbm [shape: f32[8,128], index: 5, kind: output, shape index: {}]  }
   0x1   :  { %11 = vsyncpa [#allocation6], 0 }
   0x2   :  { %12 = vsyncpa [#allocation4], 0  ;;  %s2779_s18 = smov [#allocation5]   ;;  %s2685_s22 = scalar_lea.hbm %s2885_s1, 25088 }
   0x3   :  { %s28_s19 = sshll.u32 %s2779_s18, 4  ;;  %p2686_p0 = scmp.ne.s32.totalorder %s2885_s1, %s2685_s22  ;;  %s29_s19 = int_to_ptr.vmem [resolvable:$true] %s28_s19 }
   0x4   :  { %p2689_p1 = scmp.lt.u32.totalorder %s2685_s22, %s2885_s1 }
   0x6   :  { %p2691_p2 = pnand %p2689_p1, %p2686_p0 }
   0x8   :  { %2694 = shalt.err (!%p2691_p2)
}
   0x9   :  { %s2695_s27 = scalar_lea.vmem %s29_s19, 25088  ;;  %p2700_p4 = scmp.lt.s32.totalorder %s29_s19, %s29_s19 }
   0xa   :  { %p2696_p3 = scmp.ne.s32.totalorder %s29_s19, %s2695_s27  ;;  %p2701_p5 = scmp.lt.s32.totalorder %s2695_s27, %s2695_s27 }
   0xc   :  { %p2702_p6 = por %p2701_p5, %p2700_p4 }
   0xe   :  { %p2703_p7 = pnand %p2702_p6, %p2696_p3 }
  0x10   :  { %2706 = shalt.err (!%p2703_p7)
}
  0x11   :  { %s2780_s28 = smov 256   ;;  %s2781_s29 = smov 16  }
  0x12   :  { %34 = dma.hbm_to_vmem [thread:$0]  %s2885_s1, 25088, %s29_s19, [#allocation6], %s2780_s28, %s2780_s28, %s2781_s29  }
  0x13   :  { %s2782_s7 = smov [#allocation2]   ;;  %s2783_s9 = smov [#allocation7]  }
  0x14   :  { %s19_s8 = sshll.u32 %s2782_s7, 4  ;;  %s42_s10 = sshll.u32 %s2783_s9, 4  ;;  %s20_s8 = int_to_ptr.vmem [resolvable:$true] %s19_s8  ;;  %s43_s10 = int_to_ptr.vmem [resolvable:$true] %s42_s10 }
  0x15   :  { %s2707_s13 = scalar_lea.hbm %s2884_s0, 448 }
  0x16   :  { %p2708_p8 = scmp.ne.s32.totalorder %s2884_s0, %s2707_s13  ;;  %p2711_p9 = scmp.lt.u32.totalorder %s2707_s13, %s2884_s0 }
  0x18   :  { %p2713_p10 = pnand %p2711_p9, %p2708_p8 }
  0x1a   :  { %2716 = shalt.err (!%p2713_p10)
}
  0x1b   :  { %s2717_s1 = scalar_lea.vmem %s20_s8, 448  ;;  %p2722_p12 = scmp.lt.s32.totalorder %s20_s8, %s20_s8 }
  0x1c   :  { %p2718_p11 = scmp.ne.s32.totalorder %s20_s8, %s2717_s1  ;;  %p2723_p13 = scmp.lt.s32.totalorder %s2717_s1, %s2717_s1 }
  0x1e   :  { %p2724_p0 = por %p2723_p13, %p2722_p12 }
  0x20   :  { %p2725_p1 = pnand %p2724_p0, %p2718_p11 }
  0x22   :  { %2728 = shalt.err (!%p2725_p1)
}
  0x23   :  { %22 = dma.hbm_to_vmem [thread:$0]  %s2884_s0, 448, %s20_s8, [#allocation3]  }
  0x24   :  { %s2729_s22 = scalar_lea.hbm %s2887_s3, 4096 }
  0x25   :  { %p2730_p2 = scmp.ne.s32.totalorder %s2887_s3, %s2729_s22  ;;  %p2733_p3 = scmp.lt.u32.totalorder %s2729_s22, %s2887_s3 }
  0x27   :  { %p2735_p4 = pnand %p2733_p3, %p2730_p2 }
  0x29   :  { %2738 = shalt.err (!%p2735_p4)
}
  0x2a   :  { %s2739_s27 = scalar_lea.vmem %s43_s10, 4096  ;;  %p2744_p6 = scmp.lt.s32.totalorder %s43_s10, %s43_s10 }
  0x2b   :  { %p2740_p5 = scmp.ne.s32.totalorder %s43_s10, %s2739_s27  ;;  %p2745_p7 = scmp.lt.s32.totalorder %s2739_s27, %s2739_s27 }
  0x2d   :  { %p2746_p8 = por %p2745_p7, %p2744_p6 }
  0x2f   :  { %p2747_p9 = pnand %p2746_p8, %p2740_p5 }
  0x31   :  { %2750 = shalt.err (!%p2747_p9)
}
  0x32   :  { %s2784_s0 = smov 64   ;;  %s2785_s28 = smov 4  }
  0x33   :  { %48 = dma.hbm_to_vmem [thread:$0]  %s2887_s3, 4096, %s43_s10, [#allocation6], %s2784_s0, %s2784_s0, %s2785_s28  }
  0x34   :  { %2773 = dma.done.wait [#allocation3], 448  }
  0x35   :  { %2774 = vsyncadd [#allocation3], 4294966848 }
  0x36   :  { %2775 = dma.done.wait [#allocation6], 29184  }
  0x37   :  { %2776 = vsyncadd [#allocation6], 4294938112  ;;  %v2332_v0 = vld [vmem:[#allocation5 + $0x4] ss:$16 sps:$4 sm:$0xff]   ;;  %v2334_v1 = vld [vmem:[#allocation5 + $0xc] ss:$16 sps:$4 sm:$0xff]  }
  0x38   :  { %1291 = vmatprep.subr.bf16.mxu0 %v2332_v0  ;;  %v2336_v2 = vld [vmem:[#allocation5] ss:$16 sps:$4 sm:$0xff]   ;;  %v2337_v3 = vld [vmem:[#allocation5 + $0x8] ss:$16 sps:$4 sm:$0xff]   ;;  %1455 = vmatprep.subr.bf16.mxu1 %v2334_v1  ;;  %v2338_v4 = vld [vmem:[#allocation5 + $0x24] ss:$16 sps:$4 sm:$0xff]  }
  0x39   :  { %1292 = vmatpush1.bf16.msra.mxu0 %v2336_v2  ;;  %1456 = vmatpush1.bf16.msra.mxu1 %v2337_v3  ;;  %v2340_v5 = vld [vmem:[#allocation5 + $0x2c] ss:$16 sps:$4 sm:$0xff]   ;;  %v2342_v6 = vld [vmem:[#allocation5 + $0x20] ss:$16 sps:$4 sm:$0xff]   ;;  %v2343_v7 = vld [vmem:[#allocation5 + $0x28] ss:$16 sps:$4 sm:$0xff]  }
  0x3a   :  { %1293 = vmatprep.subr.bf16.mxu0 %v2338_v4  ;;  %1457 = vmatprep.subr.bf16.mxu1 %v2340_v5  ;;  %v2344_v8 = vld [vmem:[#allocation5 + $0x44] ss:$16 sps:$4 sm:$0xff]   ;;  %v2346_v9 = vld [vmem:[#allocation5 + $0x4c] ss:$16 sps:$4 sm:$0xff]   ;;  %v2348_v10 = vld [vmem:[#allocation5 + $0x40] ss:$16 sps:$4 sm:$0xff]  }
  0x3b   :  { %v2349_v11 = vld [vmem:[#allocation5 + $0x48] ss:$16 sps:$4 sm:$0xff]   ;;  %v2350_v12 = vld [vmem:[#allocation5 + $0x64] ss:$16 sps:$4 sm:$0xff]   ;;  %v2352_v13 = vld [vmem:[#allocation5 + $0x6c] ss:$16 sps:$4 sm:$0xff]  }
  0x3c   :  { %v2354_v14 = vld [vmem:[#allocation5 + $0x60] ss:$16 sps:$4 sm:$0xff]   ;;  %v2355_v15 = vld [vmem:[#allocation5 + $0x68] ss:$16 sps:$4 sm:$0xff]   ;;  %v2356_v16 = vld [vmem:[#allocation5 + $0x84] ss:$16 sps:$4 sm:$0xff]  }
  0x3d   :  { %1294 = vmatpush1.bf16.msra.mxu0 %v2342_v6  ;;  %1458 = vmatpush1.bf16.msra.mxu1 %v2343_v7  ;;  %v2358_v17 = vld [vmem:[#allocation5 + $0x8c] ss:$16 sps:$4 sm:$0xff]   ;;  %v2360_v18 = vld [vmem:[#allocation5 + $0x80] ss:$16 sps:$4 sm:$0xff]   ;;  %v2361_v19 = vld [vmem:[#allocation5 + $0x88] ss:$16 sps:$4 sm:$0xff]  }
  0x3e   :  { %1295 = vmatprep.subr.bf16.mxu0 %v2344_v8  ;;  %1459 = vmatprep.subr.bf16.mxu1 %v2346_v9  ;;  %v2362_v20 = vld [vmem:[#allocation5 + $0xa4] ss:$16 sps:$4 sm:$0xff]   ;;  %v2364_v21 = vld [vmem:[#allocation5 + $0xac] ss:$16 sps:$4 sm:$0xff]   ;;  %v2366_v22 = vld [vmem:[#allocation5 + $0xa0] ss:$16 sps:$4 sm:$0xff]  }
  0x3f   :  { %v2367_v23 = vld [vmem:[#allocation5 + $0xa8] ss:$16 sps:$4 sm:$0xff]   ;;  %v2368_v24 = vld [vmem:[#allocation5 + $0xc4] ss:$16 sps:$4 sm:$0xff]   ;;  %v2370_v25 = vld [vmem:[#allocation5 + $0xcc] ss:$16 sps:$4 sm:$0xff]  }
  0x40   :  { %v2372_v26 = vld [vmem:[#allocation5 + $0xc0] ss:$16 sps:$4 sm:$0xff]   ;;  %v2373_v27 = vld [vmem:[#allocation5 + $0xc8] ss:$16 sps:$4 sm:$0xff]   ;;  %v2374_v28 = vld [vmem:[#allocation5 + $0xe4] ss:$16 sps:$4 sm:$0xff]  }
  0x41   :  { %1296 = vmatpush1.bf16.msra.mxu0 %v2348_v10  ;;  %1460 = vmatpush1.bf16.msra.mxu1 %v2349_v11  ;;  %v2376_v29 = vld [vmem:[#allocation5 + $0xec] ss:$16 sps:$4 sm:$0xff]   ;;  %v2378_v30 = vld [vmem:[#allocation5 + $0xe0] ss:$16 sps:$4 sm:$0xff]   ;;  %v2379_v31 = vld [vmem:[#allocation5 + $0xe8] ss:$16 sps:$4 sm:$0xff]  }
  0x42   :  { %1297 = vmatprep.subr.bf16.mxu0 %v2350_v12  ;;  %1461 = vmatprep.subr.bf16.mxu1 %v2352_v13  ;;  %v2380_v32 = vld [vmem:[#allocation5 + $0x104] ss:$16 sps:$4 sm:$0xff]   ;;  %v2382_v33 = vld [vmem:[#allocation5 + $0x10c] ss:$16 sps:$4 sm:$0xff]   ;;  %v2384_v34 = vld [vmem:[#allocation5 + $0x100] ss:$16 sps:$4 sm:$0xff]  }
  0x43   :  { %v2385_v35 = vld [vmem:[#allocation5 + $0x108] ss:$16 sps:$4 sm:$0xff]   ;;  %v2386_v36 = vld [vmem:[#allocation5 + $0x124] ss:$16 sps:$4 sm:$0xff]   ;;  %v2388_v37 = vld [vmem:[#allocation5 + $0x12c] ss:$16 sps:$4 sm:$0xff]  }
  0x44   :  { %v2390_v38 = vld [vmem:[#allocation5 + $0x120] ss:$16 sps:$4 sm:$0xff]   ;;  %v2391_v39 = vld [vmem:[#allocation5 + $0x128] ss:$16 sps:$4 sm:$0xff]   ;;  %v2392_v40 = vld [vmem:[#allocation5 + $0x144] ss:$16 sps:$4 sm:$0xff]  }
  0x45   :  { %1298 = vmatpush1.bf16.msra.mxu0 %v2354_v14  ;;  %1462 = vmatpush1.bf16.msra.mxu1 %v2355_v15  ;;  %v2394_v41 = vld [vmem:[#allocation5 + $0x14c] ss:$16 sps:$4 sm:$0xff]   ;;  %v2396_v42 = vld [vmem:[#allocation5 + $0x140] ss:$16 sps:$4 sm:$0xff]   ;;  %v2397_v43 = vld [vmem:[#allocation5 + $0x148] ss:$16 sps:$4 sm:$0xff]  }
  0x46   :  { %1299 = vmatprep.subr.bf16.mxu0 %v2356_v16  ;;  %1463 = vmatprep.subr.bf16.mxu1 %v2358_v17  ;;  %v2398_v44 = vld [vmem:[#allocation5 + $0x164] ss:$16 sps:$4 sm:$0xff]   ;;  %v2400_v45 = vld [vmem:[#allocation5 + $0x16c] ss:$16 sps:$4 sm:$0xff]   ;;  %v2402_v47 = vld [vmem:[#allocation5 + $0x160] ss:$16 sps:$4 sm:$0xff]  }
  0x47   :  { %v61_v46 = vld [vmem:[#allocation2] sm:$0xff]  ;;  %v2406_v51 = vld [vmem:[#allocation5 + $0x18c] ss:$16 sps:$4 sm:$0xff]   ;;  %v2408_v52 = vld [vmem:[#allocation5 + $0x180] ss:$16 sps:$4 sm:$0xff]   ;;  %vm1287_vm0 = vcmask 130048  }
  0x48   :  { %v2014_v48 = vcombine.high %v61_v46, %v61_v46  ;;  %v2403_v49 = vld [vmem:[#allocation5 + $0x168] ss:$16 sps:$4 sm:$0xff]   ;;  %v2404_v50 = vld [vmem:[#allocation5 + $0x184] ss:$16 sps:$4 sm:$0xff]   ;;  %v2412_v55 = vld [vmem:[#allocation5 + $0x1ac] ss:$16 sps:$4 sm:$0xff]   ;;  %v2013_v4 = vcombine.low %v61_v46, %v61_v46 }
  0x49   :  { %1300 = vmatpush1.bf16.msra.mxu0 %v2360_v18  ;;  %1464 = vmatpush1.bf16.msra.mxu1 %v2361_v19  ;;  %v2409_v53 = vld [vmem:[#allocation5 + $0x188] ss:$16 sps:$4 sm:$0xff]   ;;  %v2410_v54 = vld [vmem:[#allocation5 + $0x1a4] ss:$16 sps:$4 sm:$0xff]   ;;  %v2414_v56 = vld [vmem:[#allocation5 + $0x1a0] ss:$16 sps:$4 sm:$0xff]  }
  0x4a   :  { %1301 = vmatprep.subr.bf16.mxu0 %v2362_v20  ;;  %1465 = vmatprep.subr.bf16.mxu1 %v2364_v21  ;;  %v2415_v57 = vld [vmem:[#allocation5 + $0x1a8] ss:$16 sps:$4 sm:$0xff]   ;;  %v2416_v58 = vld [vmem:[#allocation5 + $0x1c4] ss:$16 sps:$4 sm:$0xff]   ;;  %v2418_v59 = vld [vmem:[#allocation5 + $0x1cc] ss:$16 sps:$4 sm:$0xff]  }
  0x4b   :  { %1323 = vmatprep.mubr.bf16.mxu0 %v2014_v48  ;;  %1487 = vmatprep.mubr.bf16.mxu1 %v2014_v48  ;;  %v2420_v60 = vld [vmem:[#allocation5 + $0x1c0] ss:$16 sps:$4 sm:$0xff]   ;;  %v2421_v61 = vld [vmem:[#allocation5 + $0x1c8] ss:$16 sps:$4 sm:$0xff]   ;;  %v2422_v62 = vld [vmem:[#allocation5 + $0x1e4] ss:$16 sps:$4 sm:$0xff]  }
  0x4c   :  { %v2424_v63 = vld [vmem:[#allocation5 + $0x1ec] ss:$16 sps:$4 sm:$0xff]   ;;  %v2426_v0 = vld [vmem:[#allocation5 + $0x1e0] ss:$16 sps:$4 sm:$0xff]   ;;  %v2427_v1 = vld [vmem:[#allocation5 + $0x1e8] ss:$16 sps:$4 sm:$0xff]  }
  0x4d   :  { %1302 = vmatpush1.bf16.msra.mxu0 %v2366_v22  ;;  %1466 = vmatpush1.bf16.msra.mxu1 %v2367_v23  ;;  %v2432_v2 = vld [vmem:[#allocation5 + $0x204] ss:$16 sps:$4 sm:$0xff]   ;;  %v2435_v3 = vld [vmem:[#allocation5 + $0x20c] ss:$16 sps:$4 sm:$0xff]   ;;  %v2430_v5 = vld [vmem:[#allocation5 + $0x200] ss:$16 sps:$4 sm:$0xff]  }
  0x4e   :  { %1303 = vmatprep.subr.bf16.mxu0 %v2368_v24  ;;  %1467 = vmatprep.subr.bf16.mxu1 %v2370_v25  ;;  %v2433_v6 = vld [vmem:[#allocation5 + $0x208] ss:$16 sps:$4 sm:$0xff]   ;;  %v2438_v7 = vld [vmem:[#allocation5 + $0x224] ss:$16 sps:$4 sm:$0xff]   ;;  %v2441_v8 = vld [vmem:[#allocation5 + $0x22c] ss:$16 sps:$4 sm:$0xff]  }
  0x4f   :  { %v2436_v9 = vld [vmem:[#allocation5 + $0x220] ss:$16 sps:$4 sm:$0xff]   ;;  %v2439_v10 = vld [vmem:[#allocation5 + $0x228] ss:$16 sps:$4 sm:$0xff]   ;;  %v2444_v11 = vld [vmem:[#allocation5 + $0x244] ss:$16 sps:$4 sm:$0xff]  }
  0x50   :  { %v2447_v12 = vld [vmem:[#allocation5 + $0x24c] ss:$16 sps:$4 sm:$0xff]   ;;  %v2442_v13 = vld [vmem:[#allocation5 + $0x240] ss:$16 sps:$4 sm:$0xff]   ;;  %v2445_v14 = vld [vmem:[#allocation5 + $0x248] ss:$16 sps:$4 sm:$0xff]  }
  0x51   :  { %1304 = vmatpush1.bf16.msra.mxu0 %v2372_v26  ;;  %1468 = vmatpush1.bf16.msra.mxu1 %v2373_v27  ;;  %v2450_v15 = vld [vmem:[#allocation5 + $0x264] ss:$16 sps:$4 sm:$0xff]   ;;  %v2453_v16 = vld [vmem:[#allocation5 + $0x26c] ss:$16 sps:$4 sm:$0xff]   ;;  %v2448_v17 = vld [vmem:[#allocation5 + $0x260] ss:$16 sps:$4 sm:$0xff]  }
  0x52   :  { %1305 = vmatprep.subr.bf16.mxu0 %v2374_v28  ;;  %1469 = vmatprep.subr.bf16.mxu1 %v2376_v29  ;;  %v2451_v18 = vld [vmem:[#allocation5 + $0x268] ss:$16 sps:$4 sm:$0xff]   ;;  %v2456_v19 = vld [vmem:[#allocation5 + $0x284] ss:$16 sps:$4 sm:$0xff]   ;;  %v2459_v20 = vld [vmem:[#allocation5 + $0x28c] ss:$16 sps:$4 sm:$0xff]  }
  0x53   :  { %v2454_v21 = vld [vmem:[#allocation5 + $0x280] ss:$16 sps:$4 sm:$0xff]   ;;  %v2457_v22 = vld [vmem:[#allocation5 + $0x288] ss:$16 sps:$4 sm:$0xff]   ;;  %v2462_v23 = vld [vmem:[#allocation5 + $0x2a4] ss:$16 sps:$4 sm:$0xff]  }
  0x54   :  { %v2465_v24 = vld [vmem:[#allocation5 + $0x2ac] ss:$16 sps:$4 sm:$0xff]   ;;  %v2460_v25 = vld [vmem:[#allocation5 + $0x2a0] ss:$16 sps:$4 sm:$0xff]   ;;  %v2463_v26 = vld [vmem:[#allocation5 + $0x2a8] ss:$16 sps:$4 sm:$0xff]  }
  0x55   :  { %1306 = vmatpush1.bf16.msra.mxu0 %v2378_v30  ;;  %1470 = vmatpush1.bf16.msra.mxu1 %v2379_v31  ;;  %v2468_v27 = vld [vmem:[#allocation5 + $0x2c4] ss:$16 sps:$4 sm:$0xff]   ;;  %v2471_v28 = vld [vmem:[#allocation5 + $0x2cc] ss:$16 sps:$4 sm:$0xff]   ;;  %v2466_v31 = vld [vmem:[#allocation5 + $0x2c0] ss:$16 sps:$4 sm:$0xff]  }
  0x56   :  { %1307 = vmatprep.subr.bf16.mxu0 %v2380_v32  ;;  %1471 = vmatprep.subr.bf16.mxu1 %v2382_v33  ;;  %v2854_v29 = vld [vmem:[#allocation2 + $0x8] sm:$0xff]  ;;  %v2469_v32 = vld [vmem:[#allocation5 + $0x2c8] ss:$16 sps:$4 sm:$0xff]   ;;  %v2474_v33 = vld [vmem:[#allocation5 + $0x2e4] ss:$16 sps:$4 sm:$0xff]  }
  0x57   :  { %v2016_v30 = vcombine.high %v2854_v29, %v2854_v29  ;;  %v2495_v46 = vld [vmem:[#allocation5 + $0x34c] ss:$16 sps:$4 sm:$0xff]   ;;  %v2493_v48 = vld [vmem:[#allocation5 + $0x348] ss:$16 sps:$4 sm:$0xff]  }
  0x59   :  { %1308 = vmatpush1.bf16.msra.mxu0 %v2384_v34  ;;  %1472 = vmatpush1.bf16.msra.mxu1 %v2385_v35  ;;  %v2477_v34 = vld [vmem:[#allocation5 + $0x2ec] ss:$16 sps:$4 sm:$0xff]   ;;  %v2472_v35 = vld [vmem:[#allocation5 + $0x2e0] ss:$16 sps:$4 sm:$0xff]  }
  0x5a   :  { %1309 = vmatprep.subr.bf16.mxu0 %v2386_v36  ;;  %1473 = vmatprep.subr.bf16.mxu1 %v2388_v37  ;;  %v2475_v36 = vld [vmem:[#allocation5 + $0x2e8] ss:$16 sps:$4 sm:$0xff]   ;;  %v2480_v37 = vld [vmem:[#allocation5 + $0x304] ss:$16 sps:$4 sm:$0xff]  }
  0x5d   :  { %1310 = vmatpush1.bf16.msra.mxu0 %v2390_v38  ;;  %1474 = vmatpush1.bf16.msra.mxu1 %v2391_v39  ;;  %v2483_v38 = vld [vmem:[#allocation5 + $0x30c] ss:$16 sps:$4 sm:$0xff]   ;;  %v2478_v39 = vld [vmem:[#allocation5 + $0x300] ss:$16 sps:$4 sm:$0xff]  }
  0x5e   :  { %1311 = vmatprep.subr.bf16.mxu0 %v2392_v40  ;;  %1475 = vmatprep.subr.bf16.mxu1 %v2394_v41  ;;  %v2481_v40 = vld [vmem:[#allocation5 + $0x308] ss:$16 sps:$4 sm:$0xff]   ;;  %v2486_v41 = vld [vmem:[#allocation5 + $0x324] ss:$16 sps:$4 sm:$0xff]  }
  0x61   :  { %1312 = vmatpush1.bf16.msra.mxu0 %v2396_v42  ;;  %1476 = vmatpush1.bf16.msra.mxu1 %v2397_v43  ;;  %v2489_v42 = vld [vmem:[#allocation5 + $0x32c] ss:$16 sps:$4 sm:$0xff]   ;;  %v2484_v43 = vld [vmem:[#allocation5 + $0x320] ss:$16 sps:$4 sm:$0xff]  }
  0x62   :  { %1313 = vmatprep.subr.bf16.mxu0 %v2398_v44  ;;  %1477 = vmatprep.subr.bf16.mxu1 %v2400_v45  ;;  %v2487_v44 = vld [vmem:[#allocation5 + $0x328] ss:$16 sps:$4 sm:$0xff]   ;;  %v2492_v45 = vld [vmem:[#allocation5 + $0x344] ss:$16 sps:$4 sm:$0xff]  }
  0x65   :  { %1314 = vmatpush1.bf16.msra.mxu0 %v2402_v47  ;;  %1478 = vmatpush1.bf16.msra.mxu1 %v2403_v49  ;;  %v2490_v47 = vld [vmem:[#allocation5 + $0x340] ss:$16 sps:$4 sm:$0xff]   ;;  %v2498_v49 = vld [vmem:[#allocation5 + $0x364] ss:$16 sps:$4 sm:$0xff]  }
  0x66   :  { %1315 = vmatprep.subr.bf16.mxu0 %v2404_v50  ;;  %1479 = vmatprep.subr.bf16.mxu1 %v2406_v51  ;;  %v2501_v50 = vld [vmem:[#allocation5 + $0x36c] ss:$16 sps:$4 sm:$0xff]   ;;  %v2496_v51 = vld [vmem:[#allocation5 + $0x360] ss:$16 sps:$4 sm:$0xff]  }
  0x69   :  { %1316 = vmatpush1.bf16.msra.mxu0 %v2408_v52  ;;  %1480 = vmatpush1.bf16.msra.mxu1 %v2409_v53  ;;  %v2499_v52 = vld [vmem:[#allocation5 + $0x368] ss:$16 sps:$4 sm:$0xff]   ;;  %v2504_v53 = vld [vmem:[#allocation5 + $0x384] ss:$16 sps:$4 sm:$0xff]  }
  0x6a   :  { %1317 = vmatprep.subr.bf16.mxu0 %v2410_v54  ;;  %1481 = vmatprep.subr.bf16.mxu1 %v2412_v55  ;;  %v2507_v54 = vld [vmem:[#allocation5 + $0x38c] ss:$16 sps:$4 sm:$0xff]   ;;  %v2502_v55 = vld [vmem:[#allocation5 + $0x380] ss:$16 sps:$4 sm:$0xff]  }
  0x6d   :  { %1318 = vmatpush1.bf16.msra.mxu0 %v2414_v56  ;;  %1482 = vmatpush1.bf16.msra.mxu1 %v2415_v57  ;;  %v2505_v56 = vld [vmem:[#allocation5 + $0x388] ss:$16 sps:$4 sm:$0xff]   ;;  %v2510_v57 = vld [vmem:[#allocation5 + $0x3a4] ss:$16 sps:$4 sm:$0xff]  }
  0x6e   :  { %1319 = vmatprep.subr.bf16.mxu0 %v2416_v58  ;;  %1483 = vmatprep.subr.bf16.mxu1 %v2418_v59  ;;  %v2513_v58 = vld [vmem:[#allocation5 + $0x3ac] ss:$16 sps:$4 sm:$0xff]   ;;  %v2508_v59 = vld [vmem:[#allocation5 + $0x3a0] ss:$16 sps:$4 sm:$0xff]  }
  0x71   :  { %1320 = vmatpush1.bf16.msra.mxu0 %v2420_v60  ;;  %1484 = vmatpush1.bf16.msra.mxu1 %v2421_v61  ;;  %v2511_v60 = vld [vmem:[#allocation5 + $0x3a8] ss:$16 sps:$4 sm:$0xff]   ;;  %v2516_v61 = vld [vmem:[#allocation5 + $0x3c4] ss:$16 sps:$4 sm:$0xff]  }
  0x72   :  { %1321 = vmatprep.subr.bf16.mxu0 %v2422_v62  ;;  %1485 = vmatprep.subr.bf16.mxu1 %v2424_v63  ;;  %v2519_v62 = vld [vmem:[#allocation5 + $0x3cc] ss:$16 sps:$4 sm:$0xff]   ;;  %v2514_v63 = vld [vmem:[#allocation5 + $0x3c0] ss:$16 sps:$4 sm:$0xff]  }
  0x75   :  { %1322 = vmatpush1.bf16.msra.mxu0 %v2426_v0  ;;  %1486 = vmatpush1.bf16.msra.mxu1 %v2427_v1  ;;  %v2517_v0 = vld [vmem:[#allocation5 + $0x3c8] ss:$16 sps:$4 sm:$0xff]   ;;  %v2522_v1 = vld [vmem:[#allocation5 + $0x3e4] ss:$16 sps:$4 sm:$0xff]  }
  0x76   :  { %1332 = vmatprep.subr.bf16.mxu0 %v2432_v2  ;;  %1496 = vmatprep.subr.bf16.mxu1 %v2435_v3  ;;  %v2525_v2 = vld [vmem:[#allocation5 + $0x3ec] ss:$16 sps:$4 sm:$0xff]   ;;  %v2520_v3 = vld [vmem:[#allocation5 + $0x3e0] ss:$16 sps:$4 sm:$0xff]  }
  0x78   :  { %1324 = vmatmul.mubr.bf16.vlgmr.msra.gmra.mrb[0].mxu0 %v2013_v4  ;;  %1488 = vmatmul.mubr.bf16.vlgmr.msra.gmra.mrb[0].mxu1 %v2013_v4  ;;  %v2523_v4 = vld [vmem:[#allocation5 + $0x3e8] ss:$16 sps:$4 sm:$0xff]  }
  0x79   :  { %1333 = vmatpush1.bf16.msra.mxu0 %v2430_v5  ;;  %1497 = vmatpush1.bf16.msra.mxu1 %v2433_v6  ;;  %v2530_v5 = vld [vmem:[#allocation5 + $0x404] ss:$16 sps:$4 sm:$0xff]   ;;  %v2533_v6 = vld [vmem:[#allocation5 + $0x40c] ss:$16 sps:$4 sm:$0xff]  }
  0x7a   :  { %1334 = vmatprep.subr.bf16.mxu0 %v2438_v7  ;;  %1498 = vmatprep.subr.bf16.mxu1 %v2441_v8  ;;  %v2015_v7 = vcombine.low %v2854_v29, %v2854_v29  ;;  %v2528_v8 = vld [vmem:[#allocation5 + $0x400] ss:$16 sps:$4 sm:$0xff]   ;;  %v2563_v29 = vld [vmem:[#allocation5 + $0x4ac] ss:$16 sps:$4 sm:$0xff]  }
  0x7b   :  { %1364 = vmatprep.mubr.bf16.mxu0 %v2016_v30  ;;  %1528 = vmatprep.mubr.bf16.mxu1 %v2016_v30  ;;  %v2558_v30 = vld [vmem:[#allocation5 + $0x4a0] ss:$16 sps:$4 sm:$0xff]  }
  0x7d   :  { %1335 = vmatpush1.bf16.msra.mxu0 %v2436_v9  ;;  %1499 = vmatpush1.bf16.msra.mxu1 %v2439_v10  ;;  %v2531_v9 = vld [vmem:[#allocation5 + $0x408] ss:$16 sps:$4 sm:$0xff]   ;;  %v2536_v10 = vld [vmem:[#allocation5 + $0x424] ss:$16 sps:$4 sm:$0xff]  }
  0x7e   :  { %1336 = vmatprep.subr.bf16.mxu0 %v2444_v11  ;;  %1500 = vmatprep.subr.bf16.mxu1 %v2447_v12  ;;  %v2860_v11 = vld [vmem:[#allocation2 + $0x10] sm:$0xff]  ;;  %v2539_v12 = vld [vmem:[#allocation5 + $0x42c] ss:$16 sps:$4 sm:$0xff]  }
  0x81   :  { %1337 = vmatpush1.bf16.msra.mxu0 %v2442_v13  ;;  %1501 = vmatpush1.bf16.msra.mxu1 %v2445_v14  ;;  %v2018_v13 = vcombine.high %v2860_v11, %v2860_v11  ;;  %v2534_v14 = vld [vmem:[#allocation5 + $0x420] ss:$16 sps:$4 sm:$0xff]  }
  0x82   :  { %1338 = vmatprep.subr.bf16.mxu0 %v2450_v15  ;;  %1502 = vmatprep.subr.bf16.mxu1 %v2453_v16  ;;  %v2537_v15 = vld [vmem:[#allocation5 + $0x428] ss:$16 sps:$4 sm:$0xff]   ;;  %v2542_v16 = vld [vmem:[#allocation5 + $0x444] ss:$16 sps:$4 sm:$0xff]  }
  0x85   :  { %1339 = vmatpush1.bf16.msra.mxu0 %v2448_v17  ;;  %1503 = vmatpush1.bf16.msra.mxu1 %v2451_v18  ;;  %v2545_v17 = vld [vmem:[#allocation5 + $0x44c] ss:$16 sps:$4 sm:$0xff]   ;;  %v2540_v18 = vld [vmem:[#allocation5 + $0x440] ss:$16 sps:$4 sm:$0xff]  }
  0x86   :  { %1340 = vmatprep.subr.bf16.mxu0 %v2456_v19  ;;  %1504 = vmatprep.subr.bf16.mxu1 %v2459_v20  ;;  %v2543_v19 = vld [vmem:[#allocation5 + $0x448] ss:$16 sps:$4 sm:$0xff]   ;;  %v2548_v20 = vld [vmem:[#allocation5 + $0x464] ss:$16 sps:$4 sm:$0xff]  }
  0x89   :  { %1341 = vmatpush1.bf16.msra.mxu0 %v2454_v21  ;;  %1505 = vmatpush1.bf16.msra.mxu1 %v2457_v22  ;;  %v2551_v21 = vld [vmem:[#allocation5 + $0x46c] ss:$16 sps:$4 sm:$0xff]   ;;  %v2546_v22 = vld [vmem:[#allocation5 + $0x460] ss:$16 sps:$4 sm:$0xff]  }
  0x8a   :  { %1342 = vmatprep.subr.bf16.mxu0 %v2462_v23  ;;  %1506 = vmatprep.subr.bf16.mxu1 %v2465_v24  ;;  %v2549_v23 = vld [vmem:[#allocation5 + $0x468] ss:$16 sps:$4 sm:$0xff]   ;;  %v2554_v24 = vld [vmem:[#allocation5 + $0x484] ss:$16 sps:$4 sm:$0xff]  }
  0x8d   :  { %1343 = vmatpush1.bf16.msra.mxu0 %v2460_v25  ;;  %1507 = vmatpush1.bf16.msra.mxu1 %v2463_v26  ;;  %v2557_v25 = vld [vmem:[#allocation5 + $0x48c] ss:$16 sps:$4 sm:$0xff]   ;;  %v2552_v26 = vld [vmem:[#allocation5 + $0x480] ss:$16 sps:$4 sm:$0xff]  }
  0x8e   :  { %1344 = vmatprep.subr.bf16.mxu0 %v2468_v27  ;;  %1508 = vmatprep.subr.bf16.mxu1 %v2471_v28  ;;  %v2555_v27 = vld [vmem:[#allocation5 + $0x488] ss:$16 sps:$4 sm:$0xff]   ;;  %v2560_v28 = vld [vmem:[#allocation5 + $0x4a4] ss:$16 sps:$4 sm:$0xff]  }
  0x91   :  { %1345 = vmatpush1.bf16.msra.mxu0 %v2466_v31  ;;  %1509 = vmatpush1.bf16.msra.mxu1 %v2469_v32  ;;  %v2561_v31 = vld [vmem:[#allocation5 + $0x4a8] ss:$16 sps:$4 sm:$0xff]   ;;  %v2566_v32 = vld [vmem:[#allocation5 + $0x4c4] ss:$16 sps:$4 sm:$0xff]  }
  0x92   :  { %1346 = vmatprep.subr.bf16.mxu0 %v2474_v33  ;;  %1510 = vmatprep.subr.bf16.mxu1 %v2477_v34  ;;  %v2569_v33 = vld [vmem:[#allocation5 + $0x4cc] ss:$16 sps:$4 sm:$0xff]   ;;  %v2564_v34 = vld [vmem:[#allocation5 + $0x4c0] ss:$16 sps:$4 sm:$0xff]  }
  0x95   :  { %1347 = vmatpush1.bf16.msra.mxu0 %v2472_v35  ;;  %1511 = vmatpush1.bf16.msra.mxu1 %v2475_v36  ;;  %v2567_v35 = vld [vmem:[#allocation5 + $0x4c8] ss:$16 sps:$4 sm:$0xff]   ;;  %v2572_v36 = vld [vmem:[#allocation5 + $0x4e4] ss:$16 sps:$4 sm:$0xff]  }
  0x96   :  { %1348 = vmatprep.subr.bf16.mxu0 %v2480_v37  ;;  %1512 = vmatprep.subr.bf16.mxu1 %v2483_v38  ;;  %v2575_v37 = vld [vmem:[#allocation5 + $0x4ec] ss:$16 sps:$4 sm:$0xff]   ;;  %v2570_v38 = vld [vmem:[#allocation5 + $0x4e0] ss:$16 sps:$4 sm:$0xff]  }
  0x99   :  { %1349 = vmatpush1.bf16.msra.mxu0 %v2478_v39  ;;  %1513 = vmatpush1.bf16.msra.mxu1 %v2481_v40  ;;  %v2573_v39 = vld [vmem:[#allocation5 + $0x4e8] ss:$16 sps:$4 sm:$0xff]   ;;  %v2578_v40 = vld [vmem:[#allocation5 + $0x504] ss:$16 sps:$4 sm:$0xff]  }
  0x9a   :  { %1350 = vmatprep.subr.bf16.mxu0 %v2486_v41  ;;  %1514 = vmatprep.subr.bf16.mxu1 %v2489_v42  ;;  %v2581_v41 = vld [vmem:[#allocation5 + $0x50c] ss:$16 sps:$4 sm:$0xff]   ;;  %v2576_v42 = vld [vmem:[#allocation5 + $0x500] ss:$16 sps:$4 sm:$0xff]  }
  0x9d   :  { %1351 = vmatpush1.bf16.msra.mxu0 %v2484_v43  ;;  %1515 = vmatpush1.bf16.msra.mxu1 %v2487_v44  ;;  %v2579_v43 = vld [vmem:[#allocation5 + $0x508] ss:$16 sps:$4 sm:$0xff]   ;;  %v2584_v44 = vld [vmem:[#allocation5 + $0x524] ss:$16 sps:$4 sm:$0xff]  }
  0x9e   :  { %1352 = vmatprep.subr.bf16.mxu0 %v2492_v45  ;;  %1516 = vmatprep.subr.bf16.mxu1 %v2495_v46  ;;  %v2587_v45 = vld [vmem:[#allocation5 + $0x52c] ss:$16 sps:$4 sm:$0xff]   ;;  %v2582_v46 = vld [vmem:[#allocation5 + $0x520] ss:$16 sps:$4 sm:$0xff]  }
  0xa1   :  { %1353 = vmatpush1.bf16.msra.mxu0 %v2490_v47  ;;  %1517 = vmatpush1.bf16.msra.mxu1 %v2493_v48  ;;  %v2585_v47 = vld [vmem:[#allocation5 + $0x528] ss:$16 sps:$4 sm:$0xff]   ;;  %v2590_v48 = vld [vmem:[#allocation5 + $0x544] ss:$16 sps:$4 sm:$0xff]  }
  0xa2   :  { %1354 = vmatprep.subr.bf16.mxu0 %v2498_v49  ;;  %1518 = vmatprep.subr.bf16.mxu1 %v2501_v50  ;;  %v2593_v49 = vld [vmem:[#allocation5 + $0x54c] ss:$16 sps:$4 sm:$0xff]   ;;  %v2588_v50 = vld [vmem:[#allocation5 + $0x540] ss:$16 sps:$4 sm:$0xff]  }
  0xa5   :  { %1355 = vmatpush1.bf16.msra.mxu0 %v2496_v51  ;;  %1519 = vmatpush1.bf16.msra.mxu1 %v2499_v52  ;;  %v2591_v51 = vld [vmem:[#allocation5 + $0x548] ss:$16 sps:$4 sm:$0xff]   ;;  %v2596_v52 = vld [vmem:[#allocation5 + $0x564] ss:$16 sps:$4 sm:$0xff]  }
  0xa6   :  { %1356 = vmatprep.subr.bf16.mxu0 %v2504_v53  ;;  %1520 = vmatprep.subr.bf16.mxu1 %v2507_v54  ;;  %v2599_v53 = vld [vmem:[#allocation5 + $0x56c] ss:$16 sps:$4 sm:$0xff]   ;;  %v2594_v54 = vld [vmem:[#allocation5 + $0x560] ss:$16 sps:$4 sm:$0xff]  }
  0xa9   :  { %1357 = vmatpush1.bf16.msra.mxu0 %v2502_v55  ;;  %1521 = vmatpush1.bf16.msra.mxu1 %v2505_v56  ;;  %v2597_v55 = vld [vmem:[#allocation5 + $0x568] ss:$16 sps:$4 sm:$0xff]   ;;  %v2602_v56 = vld [vmem:[#allocation5 + $0x584] ss:$16 sps:$4 sm:$0xff]  }
  0xaa   :  { %1358 = vmatprep.subr.bf16.mxu0 %v2510_v57  ;;  %1522 = vmatprep.subr.bf16.mxu1 %v2513_v58  ;;  %v2605_v57 = vld [vmem:[#allocation5 + $0x58c] ss:$16 sps:$4 sm:$0xff]   ;;  %v2600_v58 = vld [vmem:[#allocation5 + $0x580] ss:$16 sps:$4 sm:$0xff]  }
  0xad   :  { %1359 = vmatpush1.bf16.msra.mxu0 %v2508_v59  ;;  %1523 = vmatpush1.bf16.msra.mxu1 %v2511_v60  ;;  %v2603_v59 = vld [vmem:[#allocation5 + $0x588] ss:$16 sps:$4 sm:$0xff]   ;;  %v2608_v60 = vld [vmem:[#allocation5 + $0x5a4] ss:$16 sps:$4 sm:$0xff]  }
  0xae   :  { %1360 = vmatprep.subr.bf16.mxu0 %v2516_v61  ;;  %1524 = vmatprep.subr.bf16.mxu1 %v2519_v62  ;;  %v2611_v61 = vld [vmem:[#allocation5 + $0x5ac] ss:$16 sps:$4 sm:$0xff]   ;;  %v2606_v62 = vld [vmem:[#allocation5 + $0x5a0] ss:$16 sps:$4 sm:$0xff]  }
  0xb1   :  { %1361 = vmatpush1.bf16.msra.mxu0 %v2514_v63  ;;  %1525 = vmatpush1.bf16.msra.mxu1 %v2517_v0  ;;  %v2609_v63 = vld [vmem:[#allocation5 + $0x5a8] ss:$16 sps:$4 sm:$0xff]   ;;  %v2614_v0 = vld [vmem:[#allocation5 + $0x5c4] ss:$16 sps:$4 sm:$0xff]  }
  0xb2   :  { %1362 = vmatprep.subr.bf16.mxu0 %v2522_v1  ;;  %1526 = vmatprep.subr.bf16.mxu1 %v2525_v2  ;;  %v2617_v1 = vld [vmem:[#allocation5 + $0x5cc] ss:$16 sps:$4 sm:$0xff]   ;;  %v2612_v2 = vld [vmem:[#allocation5 + $0x5c0] ss:$16 sps:$4 sm:$0xff]  }
  0xb5   :  { %1363 = vmatpush1.bf16.msra.mxu0 %v2520_v3  ;;  %1527 = vmatpush1.bf16.msra.mxu1 %v2523_v4  ;;  %v2615_v3 = vld [vmem:[#allocation5 + $0x5c8] ss:$16 sps:$4 sm:$0xff]   ;;  %v2620_v4 = vld [vmem:[#allocation5 + $0x5e4] ss:$16 sps:$4 sm:$0xff]  }
  0xb6   :  { %1373 = vmatprep.subr.bf16.mxu0 %v2530_v5  ;;  %1537 = vmatprep.subr.bf16.mxu1 %v2533_v6  ;;  %v2623_v5 = vld [vmem:[#allocation5 + $0x5ec] ss:$16 sps:$4 sm:$0xff]   ;;  %v2618_v6 = vld [vmem:[#allocation5 + $0x5e0] ss:$16 sps:$4 sm:$0xff]  }
  0xb8   :  { %1365 = vmatmul.mubr.bf16.vlgmr.msra.gmra.mrb[0].mxu0 %v2015_v7  ;;  %1529 = vmatmul.mubr.bf16.vlgmr.msra.gmra.mrb[0].mxu1 %v2015_v7  ;;  %v2621_v7 = vld [vmem:[#allocation5 + $0x5e8] ss:$16 sps:$4 sm:$0xff]  }
  0xb9   :  { %1374 = vmatpush1.bf16.msra.mxu0 %v2528_v8  ;;  %1538 = vmatpush1.bf16.msra.mxu1 %v2531_v9  ;;  %v2628_v8 = vld [vmem:[#allocation5 + $0x604] ss:$16 sps:$4 sm:$0xff]   ;;  %v2631_v9 = vld [vmem:[#allocation5 + $0x60c] ss:$16 sps:$4 sm:$0xff]  }
  0xba   :  { %1375 = vmatprep.subr.bf16.mxu0 %v2536_v10  ;;  %1539 = vmatprep.subr.bf16.mxu1 %v2539_v12  ;;  %v2017_v10 = vcombine.low %v2860_v11, %v2860_v11  ;;  %v2626_v12 = vld [vmem:[#allocation5 + $0x600] ss:$16 sps:$4 sm:$0xff]  }
  0xbb   :  { %1405 = vmatprep.mubr.bf16.mxu0 %v2018_v13  ;;  %1569 = vmatprep.mubr.bf16.mxu1 %v2018_v13  ;;  %v2629_v13 = vld [vmem:[#allocation5 + $0x608] ss:$16 sps:$4 sm:$0xff]   ;;  %v2635_v11 = vld [vmem:[#allocation7] sm:$0xff]  }
  0xbd   :  { %1376 = vmatpush1.bf16.msra.mxu0 %v2534_v14  ;;  %1540 = vmatpush1.bf16.msra.mxu1 %v2537_v15  ;;  %v2786_v14 = vmov 0   ;;  %v2632_v15 = vld [vmem:[#allocation2 + $0x18] ss:$0 sps:$4 sm:$0xff]  }
  0xbe   :  { %1377 = vmatprep.subr.bf16.mxu0 %v2542_v16  ;;  %1541 = vmatprep.subr.bf16.mxu1 %v2545_v17  ;;  %v2633_v16 = vld [vmem:[#allocation7 + $0x40] sm:$0xff]  }
  0xbf   :  { %v2634_v17 = vld [vmem:[#allocation7 + $0xc0] sm:$0xff]  }
  0xc1   :  { %1378 = vmatpush1.bf16.msra.mxu0 %v2540_v18  ;;  %1542 = vmatpush1.bf16.msra.mxu1 %v2543_v19  ;;  %v2636_v18 = vld [vmem:[#allocation7 + $0x80] sm:$0xff]   ;;  %v2637_v19 = vld [vmem:[#allocation7 + $0x48] sm:$0xff]  }
  0xc2   :  { %1379 = vmatprep.subr.bf16.mxu0 %v2548_v20  ;;  %1543 = vmatprep.subr.bf16.mxu1 %v2551_v21  ;;  %v2638_v20 = vld [vmem:[#allocation7 + $0xc8] sm:$0xff]  }
  0xc3   :  { %v2639_v21 = vld [vmem:[#allocation7 + $0x8] sm:$0xff]  }
  0xc5   :  { %1380 = vmatpush1.bf16.msra.mxu0 %v2546_v22  ;;  %1544 = vmatpush1.bf16.msra.mxu1 %v2549_v23  ;;  %v2640_v22 = vld [vmem:[#allocation7 + $0x88] sm:$0xff]   ;;  %v2641_v23 = vld [vmem:[#allocation7 + $0x50] sm:$0xff]  }
  0xc6   :  { %1381 = vmatprep.subr.bf16.mxu0 %v2554_v24  ;;  %1545 = vmatprep.subr.bf16.mxu1 %v2557_v25  ;;  %v2642_v24 = vld [vmem:[#allocation7 + $0xd0] sm:$0xff]  }
  0xc7   :  { %v2643_v25 = vld [vmem:[#allocation7 + $0x10] sm:$0xff]  }
  0xc9   :  { %1382 = vmatpush1.bf16.msra.mxu0 %v2552_v26  ;;  %1546 = vmatpush1.bf16.msra.mxu1 %v2555_v27  ;;  %v2644_v26 = vld [vmem:[#allocation7 + $0x90] sm:$0xff]   ;;  %v2645_v27 = vld [vmem:[#allocation7 + $0x58] sm:$0xff]  }
  0xca   :  { %1383 = vmatprep.subr.bf16.mxu0 %v2560_v28  ;;  %1547 = vmatprep.subr.bf16.mxu1 %v2563_v29  ;;  %v2646_v28 = vld [vmem:[#allocation7 + $0xd8] sm:$0xff]  }
  0xcb   :  { %v2647_v29 = vld [vmem:[#allocation7 + $0x18] sm:$0xff]  }
  0xcd   :  { %1384 = vmatpush1.bf16.msra.mxu0 %v2558_v30  ;;  %1548 = vmatpush1.bf16.msra.mxu1 %v2561_v31  ;;  %v2648_v30 = vld [vmem:[#allocation7 + $0x98] sm:$0xff]   ;;  %v2649_v31 = vld [vmem:[#allocation7 + $0x60] sm:$0xff]  }
  0xce   :  { %1385 = vmatprep.subr.bf16.mxu0 %v2566_v32  ;;  %1549 = vmatprep.subr.bf16.mxu1 %v2569_v33  ;;  %v2650_v32 = vld [vmem:[#allocation7 + $0xe0] sm:$0xff]  }
  0xcf   :  { %v2651_v33 = vld [vmem:[#allocation7 + $0x20] sm:$0xff]  }
  0xd1   :  { %1386 = vmatpush1.bf16.msra.mxu0 %v2564_v34  ;;  %1550 = vmatpush1.bf16.msra.mxu1 %v2567_v35  ;;  %v2652_v34 = vld [vmem:[#allocation7 + $0xa0] sm:$0xff]   ;;  %v2653_v35 = vld [vmem:[#allocation7 + $0x68] sm:$0xff]  }
  0xd2   :  { %1387 = vmatprep.subr.bf16.mxu0 %v2572_v36  ;;  %1551 = vmatprep.subr.bf16.mxu1 %v2575_v37  ;;  %v2654_v36 = vld [vmem:[#allocation7 + $0xe8] sm:$0xff]  }
  0xd3   :  { %v2655_v37 = vld [vmem:[#allocation7 + $0x28] sm:$0xff]  }
  0xd5   :  { %1388 = vmatpush1.bf16.msra.mxu0 %v2570_v38  ;;  %1552 = vmatpush1.bf16.msra.mxu1 %v2573_v39  ;;  %v2656_v38 = vld [vmem:[#allocation7 + $0xa8] sm:$0xff]   ;;  %v2657_v39 = vld [vmem:[#allocation7 + $0x70] sm:$0xff]  }
  0xd6   :  { %1389 = vmatprep.subr.bf16.mxu0 %v2578_v40  ;;  %1553 = vmatprep.subr.bf16.mxu1 %v2581_v41  ;;  %v2658_v40 = vld [vmem:[#allocation7 + $0xf0] sm:$0xff]  }
  0xd7   :  { %v2659_v41 = vld [vmem:[#allocation7 + $0x30] sm:$0xff]  }
  0xd9   :  { %1390 = vmatpush1.bf16.msra.mxu0 %v2576_v42  ;;  %1554 = vmatpush1.bf16.msra.mxu1 %v2579_v43  ;;  %v2660_v42 = vld [vmem:[#allocation7 + $0xb0] sm:$0xff]   ;;  %v2661_v43 = vld [vmem:[#allocation7 + $0x78] sm:$0xff]  }
  0xda   :  { %1391 = vmatprep.subr.bf16.mxu0 %v2584_v44  ;;  %1555 = vmatprep.subr.bf16.mxu1 %v2587_v45  ;;  %v2662_v44 = vld [vmem:[#allocation7 + $0xf8] sm:$0xff]  }
  0xdb   :  { %v2663_v45 = vld [vmem:[#allocation7 + $0x38] sm:$0xff]  }
  0xdd   :  { %1392 = vmatpush1.bf16.msra.mxu0 %v2582_v46  ;;  %1556 = vmatpush1.bf16.msra.mxu1 %v2585_v47  ;;  %v2664_v46 = vld [vmem:[#allocation7 + $0xb8] sm:$0xff]   ;;  %v263_v47 = vlaneseq }
  0xde   :  { %1393 = vmatprep.subr.bf16.mxu0 %v2590_v48  ;;  %1557 = vmatprep.subr.bf16.mxu1 %v2593_v49 }
  0xdf   :  { %v264_v48 = vshrl.u32 %v263_v47, 7 }
  0xe1   :  { %1394 = vmatpush1.bf16.msra.mxu0 %v2588_v50  ;;  %1558 = vmatpush1.bf16.msra.mxu1 %v2591_v51  ;;  %v265_v49 = vsub.s32 0, %v264_v48  ;;  %v273_v50 = vsub.s32 2, %v264_v48  ;;  %v261_v51 = vld [vmem:[%s2886_s2] sm:$0xf] }
  0xe2   :  { %1395 = vmatprep.subr.bf16.mxu0 %v2596_v52  ;;  %1559 = vmatprep.subr.bf16.mxu1 %v2599_v53  ;;  %v269_v52 = vsub.s32 1, %v264_v48  ;;  %v277_v53 = vsub.s32 3, %v264_v48 }
  0xe5   :  { %1396 = vmatpush1.bf16.msra.mxu0 %v2594_v54  ;;  %1560 = vmatpush1.bf16.msra.mxu1 %v2597_v55  ;;  %v266_v54 = vrot.slane %v261_v51, %v265_v49  ;;  %v274_v55 = vrot.slane %v261_v51, %v273_v50 }
  0xe6   :  { %1397 = vmatprep.subr.bf16.mxu0 %v2602_v56  ;;  %1561 = vmatprep.subr.bf16.mxu1 %v2605_v57  ;;  %v270_v56 = vrot.slane %v261_v51, %v269_v52  ;;  %v278_v57 = vrot.slane %v261_v51, %v277_v53 }
  0xe9   :  { %1398 = vmatpush1.bf16.msra.mxu0 %v2600_v58  ;;  %1562 = vmatpush1.bf16.msra.mxu1 %v2603_v59 }
  0xea   :  { %1399 = vmatprep.subr.bf16.mxu0 %v2608_v60  ;;  %1563 = vmatprep.subr.bf16.mxu1 %v2611_v61 }
  0xed   :  { %1400 = vmatpush1.bf16.msra.mxu0 %v2606_v62  ;;  %1564 = vmatpush1.bf16.msra.mxu1 %v2609_v63 }
  0xee   :  { %1401 = vmatprep.subr.bf16.mxu0 %v2614_v0  ;;  %1565 = vmatprep.subr.bf16.mxu1 %v2617_v1 }
  0xf1   :  { %1402 = vmatpush1.bf16.msra.mxu0 %v2612_v2  ;;  %1566 = vmatpush1.bf16.msra.mxu1 %v2615_v3 }
  0xf2   :  { %1403 = vmatprep.subr.bf16.mxu0 %v2620_v4  ;;  %1567 = vmatprep.subr.bf16.mxu1 %v2623_v5 }
  0xf5   :  { %1404 = vmatpush1.bf16.msra.mxu0 %v2618_v6  ;;  %1568 = vmatpush1.bf16.msra.mxu1 %v2621_v7 }
  0xf6   :  { %1414 = vmatprep.subr.bf16.mxu0 %v2628_v8  ;;  %1578 = vmatprep.subr.bf16.mxu1 %v2631_v9 }
  0xf8   :  { %1406 = vmatmul.mubr.bf16.vlgmr.msra.gmra.mrb[0].mxu0 %v2017_v10  ;;  %1570 = vmatmul.mubr.bf16.vlgmr.msra.gmra.mrb[0].mxu1 %v2017_v10 }
  0xf9   :  { %1415 = vmatpush1.bf16.msra.mxu0 %v2626_v12  ;;  %1579 = vmatpush1.bf16.msra.mxu1 %v2629_v13 }
  0xfa   :  { %1446 = vmatprep.mubr.bf16.mxu0 %v2786_v14  ;;  %1610 = vmatprep.mubr.bf16.mxu1 %v2786_v14 }
  0xfb   :  { %2251 = vmatprep.subr.bf16.mxu0 %v2633_v16  ;;  %2273 = vmatprep.subr.bf16.mxu1 %v2634_v17 }
 0x104   :  { %2216 = vmatmul.mubr.msk.bf16.vlgmr.msra.gmra.mrb[0].mxu0 %vm1287_vm0, %v2632_v15  ;;  %2217 = vmatmul.mubr.msk.bf16.vlgmr.msra.gmra.mrb[0].mxu1 %vm1287_vm0, %v2632_v15 }
 0x105   :  { %2252 = vmatpush3.bf16.msra.mxu0 %v2635_v11  ;;  %2274 = vmatpush3.bf16.msra.mxu1 %v2636_v18 }
 0x106   :  { %2253 = vmatprep.subr.bf16.mxu0 %v2637_v19  ;;  %2275 = vmatprep.subr.bf16.mxu1 %v2638_v20 }
 0x109   :  { %2254 = vmatpush3.bf16.msra.mxu0 %v2639_v21  ;;  %2276 = vmatpush3.bf16.msra.mxu1 %v2640_v22 }
 0x10a   :  { %2255 = vmatprep.subr.bf16.mxu0 %v2641_v23  ;;  %2277 = vmatprep.subr.bf16.mxu1 %v2642_v24 }
 0x10d   :  { %2256 = vmatpush3.bf16.msra.mxu0 %v2643_v25  ;;  %2278 = vmatpush3.bf16.msra.mxu1 %v2644_v26 }
 0x10e   :  { %2257 = vmatprep.subr.bf16.mxu0 %v2645_v27  ;;  %2279 = vmatprep.subr.bf16.mxu1 %v2646_v28 }
 0x111   :  { %2258 = vmatpush3.bf16.msra.mxu0 %v2647_v29  ;;  %2280 = vmatpush3.bf16.msra.mxu1 %v2648_v30 }
 0x112   :  { %2259 = vmatprep.subr.bf16.mxu0 %v2649_v31  ;;  %2281 = vmatprep.subr.bf16.mxu1 %v2650_v32  ;;  %v2218_v32 = vld [vmem:[%s2888_s4] ss:$0 sm:$0xff]  ;;  %s2787_s4 = smov [#allocation8]  }
 0x113   :  { %s2003_s8 = sshll.u32 %s2787_s4, 4  ;;  %s2004_s8 = int_to_ptr.vmem [resolvable:$true] %s2003_s8 }
 0x114   :  { %s2751_s9 = scalar_lea.vmem %s2004_s8, 128  ;;  %p2756_p11 = scmp.lt.s32.totalorder %s2004_s8, %s2004_s8 }
 0x115   :  { %2260 = vmatpush3.bf16.msra.mxu0 %v2651_v33  ;;  %2282 = vmatpush3.bf16.msra.mxu1 %v2652_v34  ;;  %p2752_p10 = scmp.ne.s32.totalorder %s2004_s8, %s2751_s9  ;;  %p2757_p12 = scmp.lt.s32.totalorder %s2751_s9, %s2751_s9 }
 0x116   :  { %2261 = vmatprep.subr.bf16.mxu0 %v2653_v35  ;;  %2283 = vmatprep.subr.bf16.mxu1 %v2654_v36 }
 0x117   :  { %p2758_p13 = por %p2757_p12, %p2756_p11 }
 0x119   :  { %2262 = vmatpush3.bf16.msra.mxu0 %v2655_v37  ;;  %2284 = vmatpush3.bf16.msra.mxu1 %v2656_v38  ;;  %p2759_p0 = pnand %p2758_p13, %p2752_p10 }
 0x11a   :  { %2263 = vmatprep.subr.bf16.mxu0 %v2657_v39  ;;  %2285 = vmatprep.subr.bf16.mxu1 %v2658_v40 }
 0x11d   :  { %2264 = vmatpush3.bf16.msra.mxu0 %v2659_v41  ;;  %2286 = vmatpush3.bf16.msra.mxu1 %v2660_v42 }
 0x11e   :  { %2265 = vmatprep.subr.bf16.mxu0 %v2661_v43  ;;  %2287 = vmatprep.subr.bf16.mxu1 %v2662_v44 }
 0x121   :  { %2266 = vmatpush3.bf16.msra.mxu0 %v2663_v45  ;;  %2288 = vmatpush3.bf16.msra.mxu1 %v2664_v46 }
 0x1d7   :  { %v1448_v58 = vpop.f32.mrb[0].mxu0  ;;  %v1612_v59 = vpop.f32.mrb[0].mxu1 }
 0x1d8   :  { %v2295_v60 = vadd.f32 %v1448_v58, %v266_v54  ;;  %v2297_v61 = vadd.f32 %v1612_v59, %v274_v55  ;;  %v1450_v62 = vpop.f32.mrb[1].mxu0  ;;  %v1614_v63 = vpop.f32.mrb[1].mxu1 }
 0x1d9   :  { %v2296_v0 = vadd.f32 %v1450_v62, %v270_v56  ;;  %v2298_v1 = vadd.f32 %v1614_v63, %v278_v57  ;;  %v1452_v2 = vpop.f32.mrb[2].mxu0  ;;  %v1616_v3 = vpop.f32.mrb[2].mxu1 }
 0x1da   :  { %v1619_v4 = vsub.f32 0.0, %v2295_v60  ;;  %v1621_v5 = vsub.f32 0.0, %v2297_v61  ;;  %v1453_v6 = vpop.f32.mrb[3].mxu0  ;;  %v1617_v7 = vpop.f32.mrb[3].mxu1 }
 0x1db   :  { %v1620_v8 = vsub.f32 0.0, %v2296_v0  ;;  %v1622_v9 = vsub.f32 0.0, %v2298_v1 }
 0x1dc   :  { %v1623_v10 = vmul.f32 1.442695, %v1619_v4  ;;  %v1627_v12 = vmul.f32 1.442695, %v1621_v5 }
 0x1dd   :  { %v1625_v13 = vmul.f32 1.442695, %v1620_v8  ;;  %v1629_v14 = vmul.f32 1.442695, %v1622_v9 }
 0x1de   :  { %2665 = vpow2.f32 %v1623_v10 }
 0x1df   :  { %2667 = vpow2.f32 %v1627_v12 }
 0x1e0   :  { %2669 = vpow2.f32 %v1625_v13 }
 0x1e1   :  { %2671 = vpow2.f32 %v1629_v14 }
 0x1e8   :  { %v2666_v15 = vpop.eup %2665 }
 0x1e9   :  { %v2668_v16 = vpop.eup %2667  ;;  %v1631_v17 = vadd.f32 1.0, %v2666_v15 }
 0x1ea   :  { %v2670_v11 = vpop.eup %2669  ;;  %v1633_v18 = vadd.f32 1.0, %v2668_v16 }
 0x1eb   :  { %v2672_v19 = vpop.eup %2671  ;;  %2673 = vrcp.f32 %v1631_v17  ;;  %v1632_v20 = vadd.f32 1.0, %v2670_v11 }
 0x1ec   :  { %2675 = vrcp.f32 %v1633_v18  ;;  %v1634_v21 = vadd.f32 1.0, %v2672_v19 }
 0x1ed   :  { %2677 = vrcp.f32 %v1632_v20 }
 0x1ee   :  { %2679 = vrcp.f32 %v1634_v21 }
 0x1f5   :  { %v2674_v22 = vpop.eup %2673 }
 0x1f6   :  { %v2676_v23 = vpop.eup %2675  ;;  %v1639_v28 = vpack.c.bf16 %v2674_v22, %v2674_v22 }
 0x1f7   :  { %v2678_v24 = vpop.eup %2677  ;;  %v1641_v29 = vpack.c.bf16 %v2676_v23, %v2676_v23 }
 0x1f8   :  { %v2680_v25 = vpop.eup %2679  ;;  %v1640_v26 = vpack.c.bf16 %v2678_v24, %v2678_v24 }
 0x1f9   :  { %v1642_v27 = vpack.c.bf16 %v2680_v25, %v2680_v25 }
 0x1fa   :  { %1938 = vmatprep.mubr.bf16.mxu0 %v1640_v26 }
 0x1fb   :  { %1978 = vmatprep.mubr.bf16.mxu1 %v1642_v27  ;;  %1939 = vmatmul.mubr.bf16.vlgmr.msra.gmra.mrb[4].mxu0 %v1639_v28 }
 0x1fc   :  { %1979 = vmatmul.mubr.bf16.vlgmr.msra.gmra.mrb[4].mxu1 %v1641_v29 }
 0x2ce   :  { %v2267_v30 = vpop.f32.mrb[4].mxu0 }
 0x2cf   :  { %v2289_v31 = vpop.f32.mrb[4].mxu1  ;;  %v2268_v33 = vpop.f32.mrb[5].mxu0 }
 0x2d0   :  { %v2269_v34 = vadd.f32 %v2268_v33, %v2267_v30  ;;  %v2290_v35 = vpop.f32.mrb[5].mxu1  ;;  %v2270_v36 = vpop.f32.mrb[6].mxu0 }
 0x2d1   :  { %v2291_v37 = vadd.f32 %v2290_v35, %v2289_v31  ;;  %v2292_v38 = vpop.f32.mrb[6].mxu1  ;;  %v2271_v39 = vpop.f32.mrb[7].mxu0 }
 0x2d2   :  { %v1941_v40 = vadd.f32 %v2269_v34, %v2218_v32  ;;  %v2293_v41 = vpop.f32.mrb[7].mxu1 }
 0x2d4   :  { %v1981_v42 = vadd.f32 %v2291_v37, %v1941_v40 }
 0x2d6   :  { %1986 = vmax.xlane.f32.xlu0 %v1981_v42 }
 0x363   :  { %v1987_v43 = vpop.xlane.xlu0 %1986 }
 0x364   :  { %v1988_v44 = vsub.f32 %v1981_v42, %v1987_v43 }
 0x366   :  { %v1989_v45 = vmul.f32 1.442695, %v1988_v44 }
 0x368   :  { %2681 = vpow2.f32 %v1989_v45 }
 0x372   :  { %v2682_v46 = vpop.eup %2681 }
 0x373   :  { %1991 = vadd.xlane.f32.xlu0 %v2682_v46 }
 0x400   :  { %v1992_v47 = vpop.xlane.xlu0 %1991 }
 0x401   :  { %2683 = vlog2.f32 %v1992_v47 }
 0x40b   :  { %v2684_v48 = vpop.eup %2683 }
 0x40c   :  { %v1994_v49 = vmul.f32 0.6931472, %v2684_v48 }
 0x40e   :  { %v1995_v50 = vsub.f32 %v1988_v44, %v1994_v49 }
 0x410   :  { %1996 = vst [vmem:[#allocation8] sm:$0xff] %v1995_v50 }
 0x411   :  { %2762 = shalt.err (!%p2759_p0)
}
 0x412   :  { %s2763_s12 = scalar_lea.hbm %s2889_s5, 128 }
 0x413   :  { %p2764_p1 = scmp.ne.s32.totalorder %s2889_s5, %s2763_s12  ;;  %p2767_p2 = scmp.lt.u32.totalorder %s2763_s12, %s2889_s5 }
 0x415   :  { %p2769_p3 = pnand %p2767_p2, %p2764_p1 }
 0x417   :  { %2772 = shalt.err (!%p2769_p3)
}
 0x418   :  { %2006 = dma.vmem_to_hbm [thread:$0]  %s2004_s8, 128, %s2889_s5, [#allocation4]  }
 0x419   :  { %2777 = dma.done.wait [#allocation4], 128  }
 0x41a   :  { %2778 = vsyncadd [#allocation4], 4294967168 }
 0x41b   :  { %2010 = vsyncpa [#allocation3], 1 }
 0x41c   :  { %2011 = vsyncpa [#allocation6], 1 }
 0x41d   :  { %2012 = vsyncpa [#allocation4], 1 }

</bundles_post_ra>
